<compile_context>
chip_gen: v7x
topology: tpu7x:2x2x1
jax: 0.10.0
libtpu: 0.0.40
codegen_flags: <defaults>
</compile_context>

<pallas_src>
import jax
import jax.numpy as jnp
from jax.experimental import pallas as pl
from jax.experimental.pallas import tpu as pltpu


def _hardswish(x):
    # PyTorch nn.Hardswish: x * relu6(x + 3) / 6
    return x * jnp.clip(x + 3.0, 0.0, 6.0) * (1.0 / 6.0)


def _round_up(x, m):
    return ((x + m - 1) // m) * m


def actor_sac_fwd_kernel(
    x_ref,                                   # (TB, state_dim)
    w0_ref, b0_ref,                          # Linear(state_dim -> L), ReLU
    wd1_ref, bd1_ref,                        # DenseNet.dense1: Linear(L -> L), Hardswish
    wd2a_ref, wd2b_ref, bd2_ref,             # DenseNet.dense2: Linear(2L -> 2L), split on input
    wa1a_ref, wa1b_ref, wa1c_ref, ba1_ref,   # net_a_avg[0]: Linear(4L -> mid), split on input
    wa2_ref, ba2_ref,                        # net_a_avg[2]: Linear(mid -> OUT_PAD), zero-padded cols
    out_ref,                                 # (TB, OUT_PAD) or (TB, action_dim)
):
    wdt = w0_ref.dtype                       # matmul-input dtype (f32 or bf16)
    x = x_ref[...].astype(wdt)

    # net_state: Linear + ReLU (dot accumulates in f32; elementwise in f32).
    h = jnp.maximum(
        jnp.dot(x, w0_ref[...], preferred_element_type=jnp.float32) + b0_ref[...],
        0.0,
    )  # (TB, L) f32
    hc = h.astype(wdt)

    # DenseNet.dense1
    d1 = _hardswish(
        jnp.dot(hc, wd1_ref[...], preferred_element_type=jnp.float32) + bd1_ref[...]
    )  # (TB, L) f32
    d1c = d1.astype(wdt)

    # DenseNet.dense2 on x2 = concat([h, d1]) — concat folded into split weights.
    u2 = (
        jnp.dot(hc, wd2a_ref[...], preferred_element_type=jnp.float32)
        + jnp.dot(d1c, wd2b_ref[...], preferred_element_type=jnp.float32)
        + bd2_ref[...]
    )
    d2 = _hardswish(u2)  # (TB, 2L) f32
    d2c = d2.astype(wdt)

    # net_a_avg[0] on x3 = concat([h, d1, d2]) — concat folded into split weights.
    ua = (
        jnp.dot(hc, wa1a_ref[...], preferred_element_type=jnp.float32)
        + jnp.dot(d1c, wa1b_ref[...], preferred_element_type=jnp.float32)
        + jnp.dot(d2c, wa1c_ref[...], preferred_element_type=jnp.float32)
        + ba1_ref[...]
    )
    a1 = _hardswish(ua)  # (TB, mid) f32

    # net_a_avg[2]: Linear(mid -> OUT_PAD) + tanh.  Padded columns carry zero
    # weight/bias (tanh(0)=0).  The store width follows out_ref: either the
    # full lane-dense slab or the first action_dim columns (masked store).
    out = jnp.tanh(
        jnp.dot(a1.astype(wdt), wa2_ref[...], preferred_element_type=jnp.float32)
        + ba2_ref[...]
    )
    out_ref[...] = out[:, : out_ref.shape[1]].astype(out_ref.dtype)


def _linear_params(key, in_dim, out_dim):
    """Deterministic init mimicking PyTorch nn.Linear default (uniform +-1/sqrt(in))."""
    kw, kb = jax.random.split(key)
    bound = 1.0 / jnp.sqrt(jnp.float32(in_dim))
    w = jax.random.uniform(kw, (in_dim, out_dim), jnp.float32, -bound, bound)
    b = jax.random.uniform(kb, (1, out_dim), jnp.float32, -bound, bound)
    return w, b


def make_actor_sac_params(key, mid_dim, state_dim, action_dim):
    L = mid_dim // 2
    keys = jax.random.split(key, 5)
    w0, b0 = _linear_params(keys[0], state_dim, L)            # net_state Linear
    wd1, bd1 = _linear_params(keys[1], L, L)                  # dense1
    wd2, bd2 = _linear_params(keys[2], 2 * L, 2 * L)          # dense2
    wa1, ba1 = _linear_params(keys[3], 4 * L, mid_dim)        # net_a_avg[0]
    wa2, ba2 = _linear_params(keys[4], mid_dim, action_dim)   # net_a_avg[2]
    return dict(w0=w0, b0=b0, wd1=wd1, bd1=bd1, wd2=wd2, bd2=bd2,
                wa1=wa1, ba1=ba1, wa2=wa2, ba2=ba2)


def _estimate_vmem_bytes(TB, state_dim, L, mid, out_pad, out_cols, weight_bytes):
    """Rough per-call VMEM footprint: double-buffered I/O tiles, resident
    weights (x2 for default double-buffering), lane-padded intermediates."""
    lane = lambda n: _round_up(max(n, 128), 128)
    io = 2 * TB * lane(state_dim) * 4 + 2 * TB * lane(out_cols) * 4
    inter = TB * 4 * (2 * lane(L) + 2 * lane(2 * L) + lane(4 * L) + lane(mid) + lane(out_pad))
    return io + 2 * weight_bytes + inter


def actor_sac_forward(
    state,
    params,
    action_dim,
    *,
    batch_tile=2048,
    weight_dtype=jnp.float32,       # set jnp.bfloat16 for native MXU rate on v6e/v7x
    lane_dense_output=True,         # False -> narrow (B, action_dim) masked store
    vmem_limit_bytes=48 * 1024 * 1024,  # <= ~48 MiB is safe on v7x (64 MiB phys);
                                        # can be raised toward ~96 MiB on v5e/v6e
):
    B, state_dim = state.shape
    L = params["w0"].shape[1]
    mid = params["wa1"].shape[1]
    wdt = jnp.dtype(weight_dtype)

    # ---- Batch tiling ------------------------------------------------------
    # Large tiles amortize the fixed per-step cost; cap so the grid has >= 2
    # steps whenever possible so the "parallel" batch axis actually shards
    # across the two TensorCores on v7x.
    TB = min(batch_tile, _round_up(B, 8))
    if B >= 16:
        TB = min(TB, _round_up((B + 1) // 2, 8))
    TB = max(TB, 8)

    # ---- Output width ------------------------------------------------------
    # Compute is always lane-dense (wa2/ba2 zero-padded to OUT_PAD columns);
    # the HBM store is either the full padded slab or just action_dim columns.
    OUT_PAD = _round_up(max(action_dim, 128), 128)
    out_cols = OUT_PAD if lane_dense_output else action_dim

    # ---- VMEM budget: clamp TB if needed (matters when mid_dim grows) ------
    weight_bytes = (
        (state_dim * L + L * L + 2 * L * 2 * L + 4 * L * mid + mid * OUT_PAD) * wdt.itemsize
        + (L + L + 2 * L + mid + OUT_PAD) * 4
    )
    budget = int(0.75 * vmem_limit_bytes)
    while TB > 8 and _estimate_vmem_bytes(TB, state_dim, L, mid, OUT_PAD, out_cols,
                                          weight_bytes) > budget:
        TB = max(8, _round_up(TB // 2, 8))

    Bp = _round_up(B, TB)
    x = jnp.pad(state, ((0, Bp - B), (0, 0))) if Bp != B else state

    # ---- Weight prep: split concat-folded layers, cast matrices, pad wa2 ---
    wa2 = jnp.pad(params["wa2"], ((0, 0), (0, OUT_PAD - action_dim)))
    ba2 = jnp.pad(params["ba2"], ((0, 0), (0, OUT_PAD - action_dim)))
    wd2a, wd2b = params["wd2"][:L], params["wd2"][L:]
    wa1a, wa1b, wa1c = params["wa1"][:L], params["wa1"][L:2 * L], params["wa1"][2 * L:]

    def wcast(w):  # matmul inputs only; biases stay f32 (added post-accumulate)
        return w.astype(wdt)

    weights = (
        wcast(params["w0"]), params["b0"],
        wcast(params["wd1"]), params["bd1"],
        wcast(wd2a), wcast(wd2b), params["bd2"],
        wcast(wa1a), wcast(wa1b), wcast(wa1c), params["ba1"],
        wcast(wa2), ba2,
    )

    def const_spec(a):
        # Whole array as one block, constant block index -> resident in VMEM
        # across all grid steps (DMA'd once).
        return pl.BlockSpec(a.shape, lambda i: (0, 0))

    flops = 2 * Bp * (state_dim * L + L * L + 2 * L * 2 * L + 4 * L * mid + mid * OUT_PAD)
    cost = pl.CostEstimate(
        flops=int(flops),
        transcendentals=int(Bp * OUT_PAD),  # tanh on EUP
        bytes_accessed=int(
            x.size * x.dtype.itemsize
            + sum(int(w.size) * w.dtype.itemsize for w in weights)
            + Bp * out_cols * 4
        ),
    )

    grid = (Bp // TB,)
    out = pl.pallas_call(
        actor_sac_fwd_kernel,
        out_shape=jax.ShapeDtypeStruct((Bp, out_cols), jnp.float32),
        grid_spec=pltpu.PrefetchScalarGridSpec(
            num_scalar_prefetch=0,
            grid=grid,
            in_specs=[pl.BlockSpec((TB, state_dim), lambda i: (i, 0))]
            + [const_spec(w) for w in weights],
            out_specs=pl.BlockSpec((TB, out_cols), lambda i: (i, 0)),
        ),
        compiler_params=pltpu.CompilerParams(
            dimension_semantics=("parallel",),   # megacore sharding on v7x
            vmem_limit_bytes=vmem_limit_bytes,
        ),
        cost_estimate=cost,
    )(x, *weights)
    return out[:B, :action_dim]


def actor_sac_forward_ref(state, params):
    """Pure-JAX reference matching PyTorch semantics (f32)."""
    h = jnp.maximum(state @ params["w0"] + params["b0"], 0.0)
    d1 = _hardswish(h @ params["wd1"] + params["bd1"])
    x2 = jnp.concatenate([h, d1], axis=1)
    d2 = _hardswish(x2 @ params["wd2"] + params["bd2"])
    x3 = jnp.concatenate([x2, d2], axis=1)
    a1 = _hardswish(x3 @ params["wa1"] + params["ba1"])
    return jnp.tanh(a1 @ params["wa2"] + params["ba2"])


if __name__ == "__main__":
    mid_dim, state_dim, action_dim = 32, 16, 4

    key = jax.random.PRNGKey(0)
    k_params, k_state1, k_state2 = jax.random.split(key, 3)
    params = make_actor_sac_params(k_params, mid_dim, state_dim, action_dim)

    # 1) Small batch, f32, lane-dense output (single grid step).
    batch = 8
    state = jax.random.normal(k_state1, (batch, state_dim), jnp.float32)
    out = jax.block_until_ready(actor_sac_forward(state, params, action_dim))
    ref = actor_sac_forward_ref(state, params)
    assert out.shape == (batch, action_dim)
    assert jnp.allclose(out, ref, atol=1e-5, rtol=1e-5)

    # 2) Larger, non-multiple batch with a small tile: exercises a 3-step grid
    #    and the padded-row slicing.
    batch2 = 300
    state2 = jax.random.normal(k_state2, (batch2, state_dim), jnp.float32)
    out2 = jax.block_until_ready(
        actor_sac_forward(state2, params, action_dim, batch_tile=128)
    )
    ref2 = actor_sac_forward_ref(state2, params)
    assert out2.shape == (batch2, action_dim)
    assert jnp.allclose(out2, ref2, atol=1e-5, rtol=1e-5)

    # 3) A/B: native-width (masked-store) output path; default tile -> grid of
    #    exactly 2 steps (v7x megacore actually engaged).
    out3 = jax.block_until_ready(
        actor_sac_forward(state2, params, action_dim, lane_dense_output=False)
    )
    assert out3.shape == (batch2, action_dim)
    assert jnp.allclose(out3, ref2, atol=1e-5, rtol=1e-5)

    # 4) bf16 MXU inputs (v6e/v7x native rate); elementwise math stays f32.
    out4 = jax.block_until_ready(
        actor_sac_forward(state2, params, action_dim, weight_dtype=jnp.bfloat16)
    )
    assert out4.shape == (batch2, action_dim)
    assert jnp.allclose(out4, ref2, atol=5e-2, rtol=5e-2)

    print("KERNEL_OK")
</pallas_src>

<mosaic_0001>
module attributes {stable_mosaic.version = 11 : i64} {
  func.func @actor_sac_fwd_kernel(%arg0: i32, %arg1: memref<8x16xf32, #tpu.memory_space<vmem>>, %arg2: memref<16x16xf32, #tpu.memory_space<vmem>>, %arg3: memref<1x16xf32, #tpu.memory_space<vmem>>, %arg4: memref<16x16xf32, #tpu.memory_space<vmem>>, %arg5: memref<1x16xf32, #tpu.memory_space<vmem>>, %arg6: memref<16x32xf32, #tpu.memory_space<vmem>>, %arg7: memref<16x32xf32, #tpu.memory_space<vmem>>, %arg8: memref<1x32xf32, #tpu.memory_space<vmem>>, %arg9: memref<16x32xf32, #tpu.memory_space<vmem>>, %arg10: memref<16x32xf32, #tpu.memory_space<vmem>>, %arg11: memref<32x32xf32, #tpu.memory_space<vmem>>, %arg12: memref<1x32xf32, #tpu.memory_space<vmem>>, %arg13: memref<32x128xf32, #tpu.memory_space<vmem>>, %arg14: memref<1x128xf32, #tpu.memory_space<vmem>>, %arg15: memref<8x128xf32, #tpu.memory_space<vmem>>) attributes {dimension_semantics = [#tpu.dimension_semantics<parallel>], iteration_bounds = array<i64: 1>, scalar_prefetch = 0 : i64, scratch_operands = 0 : i64, tpu.core_type = #tpu.core_type<tc>, window_params = [{transform_indices = @transform_0, window_bounds = array<i64: 8, 16>}, {pipeline_mode = #tpu.pipeline_mode<synchronous>, transform_indices = @transform_1, window_bounds = array<i64: 16, 16>}, {pipeline_mode = #tpu.pipeline_mode<synchronous>, transform_indices = @transform_2, window_bounds = array<i64: 1, 16>}, {pipeline_mode = #tpu.pipeline_mode<synchronous>, transform_indices = @transform_3, window_bounds = array<i64: 16, 16>}, {pipeline_mode = #tpu.pipeline_mode<synchronous>, transform_indices = @transform_4, window_bounds = array<i64: 1, 16>}, {pipeline_mode = #tpu.pipeline_mode<synchronous>, transform_indices = @transform_5, window_bounds = array<i64: 16, 32>}, {pipeline_mode = #tpu.pipeline_mode<synchronous>, transform_indices = @transform_6, window_bounds = array<i64: 16, 32>}, {pipeline_mode = #tpu.pipeline_mode<synchronous>, transform_indices = @transform_7, window_bounds = array<i64: 1, 32>}, {pipeline_mode = #tpu.pipeline_mode<synchronous>, transform_indices = @transform_8, window_bounds = array<i64: 16, 32>}, {pipeline_mode = #tpu.pipeline_mode<synchronous>, transform_indices = @transform_9, window_bounds = array<i64: 16, 32>}, {pipeline_mode = #tpu.pipeline_mode<synchronous>, transform_indices = @transform_10, window_bounds = array<i64: 32, 32>}, {pipeline_mode = #tpu.pipeline_mode<synchronous>, transform_indices = @transform_11, window_bounds = array<i64: 1, 32>}, {pipeline_mode = #tpu.pipeline_mode<synchronous>, transform_indices = @transform_12, window_bounds = array<i64: 32, 128>}, {pipeline_mode = #tpu.pipeline_mode<synchronous>, transform_indices = @transform_13, window_bounds = array<i64: 1, 128>}, {transform_indices = @transform_14, window_bounds = array<i64: 8, 128>}]} {
    %c0 = arith.constant 0 : index
    %c0_0 = arith.constant 0 : index
    %0 = vector.load %arg1[%c0, %c0_0] : memref<8x16xf32, #tpu.memory_space<vmem>>, vector<8x16xf32>
    %c0_1 = arith.constant 0 : index
    %c0_2 = arith.constant 0 : index
    %1 = vector.load %arg2[%c0_1, %c0_2] : memref<16x16xf32, #tpu.memory_space<vmem>>, vector<16x16xf32>
    %cst = arith.constant dense<0.000000e+00> : vector<8x16xf32>
    %2 = tpu.matmul %0, %1, %cst {dimension_numbers = #tpu.dot_dimension_numbers<[1], [0], [0], [1], [0, 0, 1, 1], [], []>} : vector<8x16xf32>, vector<16x16xf32>, vector<8x16xf32> -> vector<8x16xf32>
    %c0_3 = arith.constant 0 : index
    %c0_4 = arith.constant 0 : index
    %3 = vector.load %arg3[%c0_3, %c0_4] : memref<1x16xf32, #tpu.memory_space<vmem>>, vector<1x16xf32>
    %4 = vector.broadcast %3 : vector<1x16xf32> to vector<8x16xf32>
    %5 = arith.addf %2, %4 : vector<8x16xf32>
    %cst_5 = arith.constant 0.000000e+00 : f32
    %6 = vector.broadcast %cst_5 : f32 to vector<8x16xf32>
    %7 = arith.maximumf %5, %6 : vector<8x16xf32>
    %c0_6 = arith.constant 0 : index
    %c0_7 = arith.constant 0 : index
    %8 = vector.load %arg4[%c0_6, %c0_7] : memref<16x16xf32, #tpu.memory_space<vmem>>, vector<16x16xf32>
    %cst_8 = arith.constant dense<0.000000e+00> : vector<8x16xf32>
    %9 = tpu.matmul %7, %8, %cst_8 {dimension_numbers = #tpu.dot_dimension_numbers<[1], [0], [0], [1], [0, 0, 1, 1], [], []>} : vector<8x16xf32>, vector<16x16xf32>, vector<8x16xf32> -> vector<8x16xf32>
    %c0_9 = arith.constant 0 : index
    %c0_10 = arith.constant 0 : index
    %10 = vector.load %arg5[%c0_9, %c0_10] : memref<1x16xf32, #tpu.memory_space<vmem>>, vector<1x16xf32>
    %11 = vector.broadcast %10 : vector<1x16xf32> to vector<8x16xf32>
    %12 = arith.addf %9, %11 : vector<8x16xf32>
    %cst_11 = arith.constant 3.000000e+00 : f32
    %13 = vector.broadcast %cst_11 : f32 to vector<8x16xf32>
    %14 = arith.addf %12, %13 : vector<8x16xf32>
    %cst_12 = arith.constant 0.000000e+00 : f32
    %cst_13 = arith.constant 6.000000e+00 : f32
    %15 = vector.broadcast %cst_12 : f32 to vector<8x16xf32>
    %16 = arith.maximumf %15, %14 : vector<8x16xf32>
    %17 = vector.broadcast %cst_13 : f32 to vector<8x16xf32>
    %18 = arith.minimumf %17, %16 : vector<8x16xf32>
    %19 = arith.mulf %12, %18 : vector<8x16xf32>
    %cst_14 = arith.constant 0.166666672 : f32
    %20 = vector.broadcast %cst_14 : f32 to vector<8x16xf32>
    %21 = arith.mulf %19, %20 : vector<8x16xf32>
    %c0_15 = arith.constant 0 : index
    %c0_16 = arith.constant 0 : index
    %22 = vector.load %arg6[%c0_15, %c0_16] : memref<16x32xf32, #tpu.memory_space<vmem>>, vector<16x32xf32>
    %cst_17 = arith.constant dense<0.000000e+00> : vector<8x32xf32>
    %23 = tpu.matmul %7, %22, %cst_17 {dimension_numbers = #tpu.dot_dimension_numbers<[1], [0], [0], [1], [0, 0, 1, 1], [], []>} : vector<8x16xf32>, vector<16x32xf32>, vector<8x32xf32> -> vector<8x32xf32>
    %c0_18 = arith.constant 0 : index
    %c0_19 = arith.constant 0 : index
    %24 = vector.load %arg7[%c0_18, %c0_19] : memref<16x32xf32, #tpu.memory_space<vmem>>, vector<16x32xf32>
    %cst_20 = arith.constant dense<0.000000e+00> : vector<8x32xf32>
    %25 = tpu.matmul %21, %24, %cst_20 {dimension_numbers = #tpu.dot_dimension_numbers<[1], [0], [0], [1], [0, 0, 1, 1], [], []>} : vector<8x16xf32>, vector<16x32xf32>, vector<8x32xf32> -> vector<8x32xf32>
    %26 = arith.addf %23, %25 : vector<8x32xf32>
    %c0_21 = arith.constant 0 : index
    %c0_22 = arith.constant 0 : index
    %27 = vector.load %arg8[%c0_21, %c0_22] : memref<1x32xf32, #tpu.memory_space<vmem>>, vector<1x32xf32>
    %28 = vector.broadcast %27 : vector<1x32xf32> to vector<8x32xf32>
    %29 = arith.addf %26, %28 : vector<8x32xf32>
    %cst_23 = arith.constant 3.000000e+00 : f32
    %30 = vector.broadcast %cst_23 : f32 to vector<8x32xf32>
    %31 = arith.addf %29, %30 : vector<8x32xf32>
    %cst_24 = arith.constant 0.000000e+00 : f32
    %cst_25 = arith.constant 6.000000e+00 : f32
    %32 = vector.broadcast %cst_24 : f32 to vector<8x32xf32>
    %33 = arith.maximumf %32, %31 : vector<8x32xf32>
    %34 = vector.broadcast %cst_25 : f32 to vector<8x32xf32>
    %35 = arith.minimumf %34, %33 : vector<8x32xf32>
    %36 = arith.mulf %29, %35 : vector<8x32xf32>
    %cst_26 = arith.constant 0.166666672 : f32
    %37 = vector.broadcast %cst_26 : f32 to vector<8x32xf32>
    %38 = arith.mulf %36, %37 : vector<8x32xf32>
    %c0_27 = arith.constant 0 : index
    %c0_28 = arith.constant 0 : index
    %39 = vector.load %arg9[%c0_27, %c0_28] : memref<16x32xf32, #tpu.memory_space<vmem>>, vector<16x32xf32>
    %cst_29 = arith.constant dense<0.000000e+00> : vector<8x32xf32>
    %40 = tpu.matmul %7, %39, %cst_29 {dimension_numbers = #tpu.dot_dimension_numbers<[1], [0], [0], [1], [0, 0, 1, 1], [], []>} : vector<8x16xf32>, vector<16x32xf32>, vector<8x32xf32> -> vector<8x32xf32>
    %c0_30 = arith.constant 0 : index
    %c0_31 = arith.constant 0 : index
    %41 = vector.load %arg10[%c0_30, %c0_31] : memref<16x32xf32, #tpu.memory_space<vmem>>, vector<16x32xf32>
    %cst_32 = arith.constant dense<0.000000e+00> : vector<8x32xf32>
    %42 = tpu.matmul %21, %41, %cst_32 {dimension_numbers = #tpu.dot_dimension_numbers<[1], [0], [0], [1], [0, 0, 1, 1], [], []>} : vector<8x16xf32>, vector<16x32xf32>, vector<8x32xf32> -> vector<8x32xf32>
    %43 = arith.addf %40, %42 : vector<8x32xf32>
    %c0_33 = arith.constant 0 : index
    %c0_34 = arith.constant 0 : index
    %44 = vector.load %arg11[%c0_33, %c0_34] : memref<32x32xf32, #tpu.memory_space<vmem>>, vector<32x32xf32>
    %cst_35 = arith.constant dense<0.000000e+00> : vector<8x32xf32>
    %45 = tpu.matmul %38, %44, %cst_35 {dimension_numbers = #tpu.dot_dimension_numbers<[1], [0], [0], [1], [0, 0, 1, 1], [], []>} : vector<8x32xf32>, vector<32x32xf32>, vector<8x32xf32> -> vector<8x32xf32>
    %46 = arith.addf %43, %45 : vector<8x32xf32>
    %c0_36 = arith.constant 0 : index
    %c0_37 = arith.constant 0 : index
    %47 = vector.load %arg12[%c0_36, %c0_37] : memref<1x32xf32, #tpu.memory_space<vmem>>, vector<1x32xf32>
    %48 = vector.broadcast %47 : vector<1x32xf32> to vector<8x32xf32>
    %49 = arith.addf %46, %48 : vector<8x32xf32>
    %cst_38 = arith.constant 3.000000e+00 : f32
    %50 = vector.broadcast %cst_38 : f32 to vector<8x32xf32>
    %51 = arith.addf %49, %50 : vector<8x32xf32>
    %cst_39 = arith.constant 0.000000e+00 : f32
    %cst_40 = arith.constant 6.000000e+00 : f32
    %52 = vector.broadcast %cst_39 : f32 to vector<8x32xf32>
    %53 = arith.maximumf %52, %51 : vector<8x32xf32>
    %54 = vector.broadcast %cst_40 : f32 to vector<8x32xf32>
    %55 = arith.minimumf %54, %53 : vector<8x32xf32>
    %56 = arith.mulf %49, %55 : vector<8x32xf32>
    %cst_41 = arith.constant 0.166666672 : f32
    %57 = vector.broadcast %cst_41 : f32 to vector<8x32xf32>
    %58 = arith.mulf %56, %57 : vector<8x32xf32>
    %c0_42 = arith.constant 0 : index
    %c0_43 = arith.constant 0 : index
    %59 = vector.load %arg13[%c0_42, %c0_43] : memref<32x128xf32, #tpu.memory_space<vmem>>, vector<32x128xf32>
    %cst_44 = arith.constant dense<0.000000e+00> : vector<8x128xf32>
    %60 = tpu.matmul %58, %59, %cst_44 {dimension_numbers = #tpu.dot_dimension_numbers<[1], [0], [0], [1], [0, 0, 1, 1], [], []>} : vector<8x32xf32>, vector<32x128xf32>, vector<8x128xf32> -> vector<8x128xf32>
    %c0_45 = arith.constant 0 : index
    %c0_46 = arith.constant 0 : index
    %61 = vector.load %arg14[%c0_45, %c0_46] : memref<1x128xf32, #tpu.memory_space<vmem>>, vector<1x128xf32>
    %62 = vector.broadcast %61 : vector<1x128xf32> to vector<8x128xf32>
    %63 = arith.addf %60, %62 : vector<8x128xf32>
    %64 = math.tanh %63 : vector<8x128xf32>
    %c0_47 = arith.constant 0 : index
    %c0_48 = arith.constant 0 : index
    %65 = vector.load %arg15[%c0_47, %c0_48] : memref<8x128xf32, #tpu.memory_space<vmem>>, vector<8x128xf32>
    tpu.vector_store %arg15[%c0_47, %c0_48], %64 {strides = array<i32>} : memref<8x128xf32, #tpu.memory_space<vmem>>, vector<8x128xf32>,
    return
  }
  func.func @transform_0(%arg0: i32) -> (i32, i32) {
    %c0_i32 = arith.constant 0 : i32
    %c0_i32_0 = arith.constant 0 : i32
    return %arg0, %c0_i32 : i32, i32
  }
  func.func @transform_1(%arg0: i32) -> (i32, i32) {
    %c0_i32 = arith.constant 0 : i32
    %c0_i32_0 = arith.constant 0 : i32
    %c0_i32_1 = arith.constant 0 : i32
    return %c0_i32, %c0_i32_0 : i32, i32
  }
  func.func @transform_2(%arg0: i32) -> (i32, i32) {
    %c0_i32 = arith.constant 0 : i32
    %c0_i32_0 = arith.constant 0 : i32
    %c0_i32_1 = arith.constant 0 : i32
    return %c0_i32, %c0_i32_0 : i32, i32
  }
  func.func @transform_3(%arg0: i32) -> (i32, i32) {
    %c0_i32 = arith.constant 0 : i32
    %c0_i32_0 = arith.constant 0 : i32
    %c0_i32_1 = arith.constant 0 : i32
    return %c0_i32, %c0_i32_0 : i32, i32
  }
  func.func @transform_4(%arg0: i32) -> (i32, i32) {
    %c0_i32 = arith.constant 0 : i32
    %c0_i32_0 = arith.constant 0 : i32
    %c0_i32_1 = arith.constant 0 : i32
    return %c0_i32, %c0_i32_0 : i32, i32
  }
  func.func @transform_5(%arg0: i32) -> (i32, i32) {
    %c0_i32 = arith.constant 0 : i32
    %c0_i32_0 = arith.constant 0 : i32
    %c0_i32_1 = arith.constant 0 : i32
    return %c0_i32, %c0_i32_0 : i32, i32
  }
  func.func @transform_6(%arg0: i32) -> (i32, i32) {
    %c0_i32 = arith.constant 0 : i32
    %c0_i32_0 = arith.constant 0 : i32
    %c0_i32_1 = arith.constant 0 : i32
    return %c0_i32, %c0_i32_0 : i32, i32
  }
  func.func @transform_7(%arg0: i32) -> (i32, i32) {
    %c0_i32 = arith.constant 0 : i32
    %c0_i32_0 = arith.constant 0 : i32
    %c0_i32_1 = arith.constant 0 : i32
    return %c0_i32, %c0_i32_0 : i32, i32
  }
  func.func @transform_8(%arg0: i32) -> (i32, i32) {
    %c0_i32 = arith.constant 0 : i32
    %c0_i32_0 = arith.constant 0 : i32
    %c0_i32_1 = arith.constant 0 : i32
    return %c0_i32, %c0_i32_0 : i32, i32
  }
  func.func @transform_9(%arg0: i32) -> (i32, i32) {
    %c0_i32 = arith.constant 0 : i32
    %c0_i32_0 = arith.constant 0 : i32
    %c0_i32_1 = arith.constant 0 : i32
    return %c0_i32, %c0_i32_0 : i32, i32
  }
  func.func @transform_10(%arg0: i32) -> (i32, i32) {
    %c0_i32 = arith.constant 0 : i32
    %c0_i32_0 = arith.constant 0 : i32
    %c0_i32_1 = arith.constant 0 : i32
    return %c0_i32, %c0_i32_0 : i32, i32
  }
  func.func @transform_11(%arg0: i32) -> (i32, i32) {
    %c0_i32 = arith.constant 0 : i32
    %c0_i32_0 = arith.constant 0 : i32
    %c0_i32_1 = arith.constant 0 : i32
    return %c0_i32, %c0_i32_0 : i32, i32
  }
  func.func @transform_12(%arg0: i32) -> (i32, i32) {
    %c0_i32 = arith.constant 0 : i32
    %c0_i32_0 = arith.constant 0 : i32
    %c0_i32_1 = arith.constant 0 : i32
    return %c0_i32, %c0_i32_0 : i32, i32
  }
  func.func @transform_13(%arg0: i32) -> (i32, i32) {
    %c0_i32 = arith.constant 0 : i32
    %c0_i32_0 = arith.constant 0 : i32
    %c0_i32_1 = arith.constant 0 : i32
    return %c0_i32, %c0_i32_0 : i32, i32
  }
  func.func @transform_14(%arg0: i32) -> (i32, i32) {
    %c0_i32 = arith.constant 0 : i32
    %c0_i32_0 = arith.constant 0 : i32
    return %arg0, %c0_i32 : i32, i32
  }
}

</mosaic_0001>

<bundles_post_ra>
// kernel: tpu_custom_call.1
= control target key start
LH: loop header
LB: loop body
LE: loop exit
PB: predicated region body
PF: predicated region fallthrough
CT: control target
= control target key end

     0   :  { %19 = vsyncpa [#allocation3], 0  ;;  %s1468_s0 = inlined_call_operand.hbm [shape: f32[8,16], index: 0, kind: input, shape index: {}]   ;;  %s1469_s1 = inlined_call_operand.hbm [shape: f32[16,16], index: 1, kind: input, shape index: {}]   ;;  %s1470_s2 = inlined_call_operand.vmem [shape: f32[1,16], index: 2, kind: input, shape index: {}]   ;;  %s1471_s3 = inlined_call_operand.hbm [shape: f32[16,16], index: 3, kind: input, shape index: {}]   ;;  %s1472_s4 = inlined_call_operand.vmem [shape: f32[1,16], index: 4, kind: input, shape index: {}]   ;;  %s1473_s5 = inlined_call_operand.hbm [shape: f32[16,32], index: 5, kind: input, shape index: {}]   ;;  %s1474_s6 = inlined_call_operand.hbm [shape: f32[16,32], index: 6, kind: input, shape index: {}]   ;;  %s1475_s7 = inlined_call_operand.vmem [shape: f32[1,32], index: 7, kind: input, shape index: {}]   ;;  %s1476_s8 = inlined_call_operand.hbm [shape: f32[16,32], index: 8, kind: input, shape index: {}]   ;;  %s1477_s9 = inlined_call_operand.hbm [shape: f32[16,32], index: 9, kind: input, shape index: {}]   ;;  %s1478_s10 = inlined_call_operand.vmem [shape: f32[32,32], index: 10, kind: input, shape index: {}]   ;;  %s1479_s11 = inlined_call_operand.vmem [shape: f32[1,32], index: 11, kind: input, shape index: {}]   ;;  %s1480_s12 = inlined_call_operand.hbm [shape: f32[32,128], index: 12, kind: input, shape index: {}]   ;;  %s1481_s13 = inlined_call_operand.vmem [shape: f32[1,128], index: 13, kind: input, shape index: {}]   ;;  %s1482_s14 = inlined_call_operand.hbm [shape: f32[8,128], index: 14, kind: output, shape index: {}]  }
   0x1   :  { %20 = vsyncpa [#allocation6], 0 }
   0x2   :  { %21 = vsyncpa [#allocation9], 0 }
   0x3   :  { %22 = vsyncpa [#allocation12], 0 }
   0x4   :  { %23 = vsyncpa [#allocation15], 0 }
   0x5   :  { %24 = vsyncpa [#allocation4], 0  ;;  %s1189_s29 = smov [#allocation5]   ;;  %s979_s17 = scalar_lea.hbm %s1469_s1, 256 }
   0x6   :  { %s40_s30 = sshll.u32 %s1189_s29, 4  ;;  %p980_p0 = scmp.ne.s32.totalorder %s1469_s1, %s979_s17  ;;  %s41_s30 = int_to_ptr.vmem [resolvable:$true] %s40_s30 }
   0x7   :  { %p983_p1 = scmp.lt.u32.totalorder %s979_s17, %s1469_s1 }
   0x9   :  { %p985_p2 = pnand %p983_p1, %p980_p0 }
   0xb   :  { %988 = shalt.err (!%p985_p2)
}
   0xc   :  { %s989_s22 = scalar_lea.vmem %s41_s30, 256  ;;  %p994_p4 = scmp.lt.s32.totalorder %s41_s30, %s41_s30 }
   0xd   :  { %p990_p3 = scmp.ne.s32.totalorder %s41_s30, %s989_s22  ;;  %p995_p5 = scmp.lt.s32.totalorder %s989_s22, %s989_s22 }
   0xf   :  { %p996_p6 = por %p995_p5, %p994_p4 }
  0x11   :  { %p997_p7 = pnand %p996_p6, %p990_p3 }
  0x13   :  { %1000 = shalt.err (!%p997_p7)
}
  0x14   :  { %s1190_s23 = smov 128   ;;  %s1191_s24 = smov 8  }
  0x15   :  { %46 = dma.hbm_to_vmem [thread:$0]  %s1469_s1, 256, %s41_s30, [#allocation6], %s1190_s23, %s1190_s23, %s1191_s24  }
  0x16   :  { %s1192_s27 = smov [#allocation8]   ;;  %s1193_s29 = smov [#allocation11]  }
  0x17   :  { %s68_s28 = sshll.u32 %s1192_s27, 4  ;;  %s94_s15 = sshll.u32 %s1193_s29, 4  ;;  %s69_s28 = int_to_ptr.vmem [resolvable:$true] %s68_s28  ;;  %s95_s15 = int_to_ptr.vmem [resolvable:$true] %s94_s15 }
  0x18   :  { %s1001_s18 = scalar_lea.hbm %s1473_s5, 256 }
  0x19   :  { %p1002_p8 = scmp.ne.s32.totalorder %s1473_s5, %s1001_s18  ;;  %p1005_p9 = scmp.lt.u32.totalorder %s1001_s18, %s1473_s5 }
  0x1b   :  { %p1007_p10 = pnand %p1005_p9, %p1002_p8 }
  0x1d   :  { %1010 = shalt.err (!%p1007_p10)
}
  0x1e   :  { %s1011_s1 = scalar_lea.vmem %s69_s28, 256  ;;  %p1016_p12 = scmp.lt.s32.totalorder %s69_s28, %s69_s28 }
  0x1f   :  { %p1012_p11 = scmp.ne.s32.totalorder %s69_s28, %s1011_s1  ;;  %p1017_p13 = scmp.lt.s32.totalorder %s1011_s1, %s1011_s1 }
  0x21   :  { %p1018_p0 = por %p1017_p13, %p1016_p12 }
  0x23   :  { %p1019_p1 = pnand %p1018_p0, %p1012_p11 }
  0x25   :  { %1022 = shalt.err (!%p1019_p1)
}
  0x26   :  { %74 = dma.hbm_to_vmem [thread:$0]  %s1473_s5, 256, %s69_s28, [#allocation9], %s1190_s23, %s1190_s23, %s1191_s24  }
  0x27   :  { %s1023_s29 = scalar_lea.hbm %s1476_s8, 256 }
  0x28   :  { %p1024_p2 = scmp.ne.s32.totalorder %s1476_s8, %s1023_s29  ;;  %p1027_p3 = scmp.lt.u32.totalorder %s1023_s29, %s1476_s8 }
  0x2a   :  { %p1029_p4 = pnand %p1027_p3, %p1024_p2 }
  0x2c   :  { %1032 = shalt.err (!%p1029_p4)
}
  0x2d   :  { %s1033_s20 = scalar_lea.vmem %s95_s15, 256  ;;  %p1038_p6 = scmp.lt.s32.totalorder %s95_s15, %s95_s15 }
  0x2e   :  { %p1034_p5 = scmp.ne.s32.totalorder %s95_s15, %s1033_s20  ;;  %p1039_p7 = scmp.lt.s32.totalorder %s1033_s20, %s1033_s20 }
  0x30   :  { %p1040_p8 = por %p1039_p7, %p1038_p6 }
  0x32   :  { %p1041_p9 = pnand %p1040_p8, %p1034_p5 }
  0x34   :  { %1044 = shalt.err (!%p1041_p9)
}
  0x35   :  { %100 = dma.hbm_to_vmem [thread:$0]  %s1476_s8, 256, %s95_s15, [#allocation12], %s1190_s23, %s1190_s23, %s1191_s24  }
  0x36   :  { %s1194_s21 = smov [#allocation2]   ;;  %s1195_s1 = smov [#allocation7]  }
  0x37   :  { %s31_s22 = sshll.u32 %s1194_s21, 4  ;;  %s54_s30 = sshll.u32 %s1195_s1, 4  ;;  %s32_s22 = int_to_ptr.vmem [resolvable:$true] %s31_s22  ;;  %s55_s30 = int_to_ptr.vmem [resolvable:$true] %s54_s30 }
  0x38   :  { %s1045_s27 = scalar_lea.hbm %s1468_s0, 128 }
  0x39   :  { %p1046_p10 = scmp.ne.s32.totalorder %s1468_s0, %s1045_s27  ;;  %p1049_p11 = scmp.lt.u32.totalorder %s1045_s27, %s1468_s0 }
  0x3b   :  { %p1051_p12 = pnand %p1049_p11, %p1046_p10 }
  0x3d   :  { %1054 = shalt.err (!%p1051_p12)
}
  0x3e   :  { %s1055_s8 = scalar_lea.vmem %s32_s22, 128  ;;  %p1060_p0 = scmp.lt.s32.totalorder %s32_s22, %s32_s22 }
  0x3f   :  { %p1056_p13 = scmp.ne.s32.totalorder %s32_s22, %s1055_s8  ;;  %p1061_p1 = scmp.lt.s32.totalorder %s1055_s8, %s1055_s8 }
  0x41   :  { %p1062_p2 = por %p1061_p1, %p1060_p0 }
  0x43   :  { %p1063_p3 = pnand %p1062_p2, %p1056_p13 }
  0x45   :  { %1066 = shalt.err (!%p1063_p3)
}
  0x46   :  { %34 = dma.hbm_to_vmem [thread:$0]  %s1468_s0, 128, %s32_s22, [#allocation3]  }
  0x47   :  { %s1067_s28 = scalar_lea.hbm %s1471_s3, 256 }
  0x48   :  { %p1068_p4 = scmp.ne.s32.totalorder %s1471_s3, %s1067_s28  ;;  %p1071_p5 = scmp.lt.u32.totalorder %s1067_s28, %s1471_s3 }
  0x4a   :  { %p1073_p6 = pnand %p1071_p5, %p1068_p4 }
  0x4c   :  { %1076 = shalt.err (!%p1073_p6)
}
  0x4d   :  { %s1077_s27 = scalar_lea.vmem %s55_s30, 256  ;;  %p1082_p8 = scmp.lt.s32.totalorder %s55_s30, %s55_s30 }
  0x4e   :  { %p1078_p7 = scmp.ne.s32.totalorder %s55_s30, %s1077_s27  ;;  %p1083_p9 = scmp.lt.s32.totalorder %s1077_s27, %s1077_s27 }
  0x50   :  { %p1084_p10 = por %p1083_p9, %p1082_p8 }
  0x52   :  { %p1085_p11 = pnand %p1084_p10, %p1078_p7 }
  0x54   :  { %1088 = shalt.err (!%p1085_p11)
}
  0x55   :  { %60 = dma.hbm_to_vmem [thread:$0]  %s1471_s3, 256, %s55_s30, [#allocation6], %s1190_s23, %s1190_s23, %s1191_s24  }
  0x56   :  { %s1196_s29 = smov [#allocation10]   ;;  %s1197_s17 = smov [#allocation13]  }
  0x57   :  { %s80_s16 = sshll.u32 %s1196_s29, 4  ;;  %s106_s18 = sshll.u32 %s1197_s17, 4  ;;  %s81_s16 = int_to_ptr.vmem [resolvable:$true] %s80_s16  ;;  %s107_s18 = int_to_ptr.vmem [resolvable:$true] %s106_s18 }
  0x58   :  { %s1089_s19 = scalar_lea.hbm %s1474_s6, 256 }
  0x59   :  { %p1090_p12 = scmp.ne.s32.totalorder %s1474_s6, %s1089_s19  ;;  %p1093_p13 = scmp.lt.u32.totalorder %s1089_s19, %s1474_s6 }
  0x5b   :  { %p1095_p0 = pnand %p1093_p13, %p1090_p12 }
  0x5d   :  { %1098 = shalt.err (!%p1095_p0)
}
  0x5e   :  { %s1099_s3 = scalar_lea.vmem %s81_s16, 256  ;;  %p1104_p2 = scmp.lt.s32.totalorder %s81_s16, %s81_s16 }
  0x5f   :  { %p1100_p1 = scmp.ne.s32.totalorder %s81_s16, %s1099_s3  ;;  %p1105_p3 = scmp.lt.s32.totalorder %s1099_s3, %s1099_s3 }
  0x61   :  { %p1106_p4 = por %p1105_p3, %p1104_p2 }
  0x63   :  { %p1107_p5 = pnand %p1106_p4, %p1100_p1 }
  0x65   :  { %1110 = shalt.err (!%p1107_p5)
}
  0x66   :  { %86 = dma.hbm_to_vmem [thread:$0]  %s1474_s6, 256, %s81_s16, [#allocation9], %s1190_s23, %s1190_s23, %s1191_s24  }
  0x67   :  { %s1111_s27 = scalar_lea.hbm %s1477_s9, 256 }
  0x68   :  { %p1112_p6 = scmp.ne.s32.totalorder %s1477_s9, %s1111_s27  ;;  %p1115_p7 = scmp.lt.u32.totalorder %s1111_s27, %s1477_s9 }
  0x6a   :  { %p1117_p8 = pnand %p1115_p7, %p1112_p6 }
  0x6c   :  { %1120 = shalt.err (!%p1117_p8)
}
  0x6d   :  { %s1121_s8 = scalar_lea.vmem %s107_s18, 256  ;;  %p1126_p10 = scmp.lt.s32.totalorder %s107_s18, %s107_s18 }
  0x6e   :  { %p1122_p9 = scmp.ne.s32.totalorder %s107_s18, %s1121_s8  ;;  %p1127_p11 = scmp.lt.s32.totalorder %s1121_s8, %s1121_s8 }
  0x70   :  { %p1128_p12 = por %p1127_p11, %p1126_p10 }
  0x72   :  { %p1129_p13 = pnand %p1128_p12, %p1122_p9 }
  0x74   :  { %1132 = shalt.err (!%p1129_p13)
}
  0x75   :  { %112 = dma.hbm_to_vmem [thread:$0]  %s1477_s9, 256, %s107_s18, [#allocation12], %s1190_s23, %s1190_s23, %s1191_s24  }
  0x76   :  { %s1198_s15 = smov [#allocation14]   ;;  %s1133_s28 = scalar_lea.hbm %s1480_s12, 512 }
  0x77   :  { %s122_s19 = sshll.u32 %s1198_s15, 4  ;;  %p1134_p0 = scmp.ne.s32.totalorder %s1480_s12, %s1133_s28  ;;  %s123_s19 = int_to_ptr.vmem [resolvable:$true] %s122_s19 }
  0x78   :  { %p1137_p1 = scmp.lt.u32.totalorder %s1133_s28, %s1480_s12 }
  0x7a   :  { %p1139_p2 = pnand %p1137_p1, %p1134_p0 }
  0x7c   :  { %1142 = shalt.err (!%p1139_p2)
}
  0x7d   :  { %s1143_s25 = scalar_lea.vmem %s123_s19, 512  ;;  %p1148_p4 = scmp.lt.s32.totalorder %s123_s19, %s123_s19 }
  0x7e   :  { %p1144_p3 = scmp.ne.s32.totalorder %s123_s19, %s1143_s25  ;;  %p1149_p5 = scmp.lt.s32.totalorder %s1143_s25, %s1143_s25 }
  0x80   :  { %p1150_p6 = por %p1149_p5, %p1148_p4 }
  0x82   :  { %p1151_p7 = pnand %p1150_p6, %p1144_p3 }
  0x84   :  { %1154 = shalt.err (!%p1151_p7)
}
  0x85   :  { %128 = dma.hbm_to_vmem [thread:$0]  %s1480_s12, 512, %s123_s19, [#allocation15], %s1190_s23, %s1190_s23, %s1191_s24  }
  0x86   :  { %1177 = dma.done.wait [#allocation3], 128  }
  0x87   :  { %1178 = vsyncadd [#allocation3], 4294967168 }
  0x88   :  { %1179 = dma.done.wait [#allocation6], 512  }
  0x89   :  { %1180 = vsyncadd [#allocation6], 4294966784 }
  0x8a   :  { %1181 = dma.done.wait [#allocation9], 512  }
  0x8b   :  { %1182 = vsyncadd [#allocation9], 4294966784 }
  0x8c   :  { %1183 = dma.done.wait [#allocation12], 512  }
  0x8d   :  { %1184 = vsyncadd [#allocation12], 4294966784 }
  0x8e   :  { %1185 = dma.done.wait [#allocation15], 512  }
  0x8f   :  { %1186 = vsyncadd [#allocation15], 4294966784  ;;  %v1199_v0 = vmov 0.0|0.0   ;;  %vm1200_vm0 = vmmov 0   ;;  %v1201_v1 = vmov 0.0   ;;  %v156_v2 = vld [vmem:[#allocation5] sm:$0xff] }
  0x90   :  { %933 = vmatprep.subr.bf16.mxu0 %v1199_v0  ;;  %873 = vmatprep.mubr.msk.f32.mxu0 %vm1200_vm0, %v1201_v1  ;;  %v157_v3 = vld [vmem:[#allocation5 + $0x8] sm:$0xff]  ;;  %v155_v5 = vld [vmem:[#allocation2] sm:$0xff]  ;;  %vm165_vm1 = vcmask 130048   ;;  %v240_v6 = vld [vmem:[#allocation7] sm:$0xff]  ;;  %vm635_vm2 = vcmask 261120   ;;  %s1202_s20 = smov [#allocation16]  }
  0x91   :  { %936 = vmatprep.subr.bf16.mxu1 %v1199_v0  ;;  %880 = vmatprep.mubr.msk.f32.mxu1 %vm1200_vm0, %v1201_v1  ;;  %v934_v4 = vpack.c.bf16 %v157_v3, %v156_v2  ;;  %v241_v7 = vld [vmem:[#allocation7 + $0x8] sm:$0xff]  ;;  %v327_v10 = vld [vmem:[#allocation8] sm:$0xff]  ;;  %v328_v11 = vld [vmem:[#allocation8 + $0x8] sm:$0xff] }
  0x92   :  { %v937_v8 = vpack.c.bf16 %v241_v7, %v240_v6  ;;  %v828_v9 = vld [vmem:[%s1470_s2] ss:$0 sm:$0xff]  ;;  %v943_v15 = vpack.c.bf16 %v328_v11, %v327_v10  ;;  %v487_v17 = vld [vmem:[#allocation11] sm:$0xff]  ;;  %v488_v18 = vld [vmem:[#allocation11 + $0x8] sm:$0xff] }
  0x93   :  { %935 = vmatpush3.bf16.msra.mxu0 %v934_v4  ;;  %v949_v19 = vpack.c.bf16 %v488_v18, %v487_v17  ;;  %v329_v20 = vld [vmem:[#allocation10] sm:$0xff]  ;;  %v330_v21 = vld [vmem:[#allocation10 + $0x8] sm:$0xff]  ;;  %v632_v40 = vld [vmem:[%s1478_s10 + $0x8] sm:$0xff] }
  0x94   :  { %939 = vmatprep.subr.bf16.mxu0 %v1199_v0  ;;  %938 = vmatpush3.bf16.msra.mxu1 %v937_v8  ;;  %v940_v22 = vpack.c.bf16 %v330_v21, %v329_v20  ;;  %v830_v23 = vld [vmem:[%s1472_s4] ss:$0 sm:$0xff]  ;;  %v489_v32 = vld [vmem:[#allocation13] sm:$0xff]  ;;  %v633_v42 = vld [vmem:[%s1478_s10 + $0x10] sm:$0xff] }
  0x95   :  { %942 = vmatprep.subr.bf16.mxu1 %v1199_v0  ;;  %v490_v33 = vld [vmem:[#allocation13 + $0x8] sm:$0xff]  ;;  %v634_v43 = vld [vmem:[%s1478_s10 + $0x18] sm:$0xff]  ;;  %v723_v58 = vld [vmem:[#allocation14] sm:$0xff] }
  0x96   :  { %874 = vmatmul.mubr.msk.f32.vlgmr.msra.gmra.mrb[0].mxu0 %vm165_vm1, %v155_v5  ;;  %v946_v37 = vpack.c.bf16 %v490_v33, %v489_v32  ;;  %v631_v39 = vld [vmem:[%s1478_s10] sm:$0xff]  ;;  %v955_v44 = vpack.c.bf16 %v634_v43, %v633_v42  ;;  %v724_v59 = vld [vmem:[#allocation14 + $0x8] sm:$0xff]  ;;  %v725_v61 = vld [vmem:[#allocation14 + $0x10] sm:$0xff] }
  0x97   :  { %887 = vmatprep.mubr.msk.f32.mxu0 %vm1200_vm0, %v1201_v1  ;;  %941 = vmatpush3.bf16.msra.mxu0 %v940_v22  ;;  %v952_v41 = vpack.c.bf16 %v632_v40, %v631_v39  ;;  %v834_v46 = vld [vmem:[%s1475_s7] ss:$0 sm:$0xff]  ;;  %v958_v60 = vpack.c.bf16 %v724_v59, %v723_v58 }
  0x98   :  { %945 = vmatprep.subr.bf16.mxu0 %v1199_v0  ;;  %v726_v62 = vld [vmem:[#allocation14 + $0x18] sm:$0xff] }
  0x99   :  { %v961_v63 = vpack.c.bf16 %v726_v62, %v725_v61  ;;  %v838_v2 = vld [vmem:[%s1479_s11] ss:$0 sm:$0xff]  ;;  %s815_s11 = sshll.u32 %s1202_s20, 4  ;;  %s816_s11 = int_to_ptr.vmem [resolvable:$true] %s815_s11 }
  0x9a   :  { %s1155_s5 = scalar_lea.vmem %s816_s11, 128  ;;  %p1160_p9 = scmp.lt.s32.totalorder %s816_s11, %s816_s11 }
  0x9b   :  { %p1156_p8 = scmp.ne.s32.totalorder %s816_s11, %s1155_s5  ;;  %p1161_p10 = scmp.lt.s32.totalorder %s1155_s5, %s1155_s5 }
  0x9d   :  { %p1162_p11 = por %p1161_p10, %p1160_p9 }
  0x9f   :  { %p1163_p12 = pnand %p1162_p11, %p1156_p8 }
 0x169   :  { %v235_v12 = vpop.f32.mrb[0].mxu0 }
 0x16a   :  { %v236_v13 = vadd.f32 %v828_v9, %v235_v12  ;;  %v875_v14 = vpop.f32.mrb[1].mxu0 }
 0x16c   :  { %v239_v16 = vmax.f32 %v236_v13, 0.0 }
 0x16e   :  { %881 = vmatmul.mubr.msk.f32.vlgmr.msra.gmra.mrb[0].mxu1 %vm165_vm1, %v239_v16 }
 0x16f   :  { %944 = vmatpush3.bf16.msra.mxu1 %v943_v15  ;;  %894 = vmatprep.mubr.msk.f32.mxu1 %vm1200_vm0, %v1201_v1 }
 0x170   :  { %948 = vmatprep.subr.bf16.mxu1 %v1199_v0 }
 0x172   :  { %895 = vmatmul.mubr.msk.f32.vlgmr.msra.gmra.mrb[2].mxu1 %vm165_vm1, %v239_v16 }
 0x173   :  { %950 = vmatpush3.bf16.msra.mxu1 %v949_v19  ;;  %908 = vmatprep.mubr.msk.f32.mxu1 %vm1200_vm0, %v1201_v1 }
 0x174   :  { %957 = vmatprep.subr.bf16.mxu1 %v1199_v0 }
 0x176   :  { %909 = vmatmul.mubr.msk.f32.vlgmr.msra.gmra.mrb[4].mxu1 %vm165_vm1, %v239_v16 }
 0x177   :  { %930 = vmatprep.mubr.msk.f32.mxu1 %vm1200_vm0, %v1201_v1  ;;  %959 = vmatpush3.bf16.msra.mxu1 %v958_v60 }
 0x178   :  { %960 = vmatprep.subr.bf16.mxu1 %v1199_v0 }
 0x17b   :  { %962 = vmatpush3.bf16.msra.mxu1 %v961_v63 }
 0x241   :  { %v318_v24 = vpop.f32.mrb[0].mxu1 }
 0x242   :  { %v319_v25 = vadd.f32 %v830_v23, %v318_v24  ;;  %v882_v26 = vpop.f32.mrb[1].mxu1 }
 0x244   :  { %v322_v27 = vadd.f32 3.0, %v319_v25 }
 0x245   :  { %v470_v28 = vpop.f32.mrb[2].mxu1 }
 0x246   :  { %v323_v29 = vmax.f32 %v322_v27, 0.0  ;;  %v896_v30 = vpop.f32.mrb[3].mxu1 }
 0x248   :  { %v324_v31 = vmin.f32 %v323_v29, 6.0 }
 0x249   :  { %v627_v34 = vpop.f32.mrb[4].mxu1 }
 0x24a   :  { %v325_v35 = vmul.f32 %v324_v31, %v319_v25  ;;  %v910_v36 = vpop.f32.mrb[5].mxu1 }
 0x24c   :  { %v326_v38 = vmul.f32 0.16666667, %v325_v35 }
 0x24e   :  { %888 = vmatmul.mubr.msk.f32.vlgmr.msra.gmra.mrb[2].mxu0 %vm165_vm1, %v326_v38 }
 0x24f   :  { %947 = vmatpush3.bf16.msra.mxu0 %v946_v37  ;;  %901 = vmatprep.mubr.msk.f32.mxu0 %vm1200_vm0, %v1201_v1 }
 0x250   :  { %951 = vmatprep.subr.bf16.mxu0 %v1199_v0 }
 0x252   :  { %902 = vmatmul.mubr.msk.f32.vlgmr.msra.gmra.mrb[4].mxu0 %vm165_vm1, %v326_v38 }
 0x253   :  { %919 = vmatprep.mubr.msk.f32.mxu0 %vm1200_vm0, %v1201_v1  ;;  %953 = vmatpush3.bf16.msra.mxu0 %v952_v41 }
 0x254   :  { %954 = vmatprep.subr.bf16.mxu0 %v1199_v0  ;;  %v839_v0 = vld [vmem:[%s1481_s13] ss:$0 sm:$0xff] }
 0x257   :  { %956 = vmatpush3.bf16.msra.mxu0 %v955_v44 }
 0x321   :  { %v400_v45 = vpop.f32.mrb[2].mxu0 }
 0x322   :  { %v471_v47 = vadd.f32 %v470_v28, %v400_v45  ;;  %v889_v48 = vpop.f32.mrb[3].mxu0 }
 0x324   :  { %v481_v49 = vadd.f32 %v834_v46, %v471_v47 }
 0x325   :  { %v557_v50 = vpop.f32.mrb[4].mxu0 }
 0x326   :  { %v482_v51 = vadd.f32 3.0, %v481_v49  ;;  %v628_v52 = vadd.f32 %v627_v34, %v557_v50  ;;  %v903_v53 = vpop.f32.mrb[5].mxu0 }
 0x328   :  { %v483_v54 = vmax.f32 %v482_v51, 0.0 }
 0x32a   :  { %v484_v55 = vmin.f32 %v483_v54, 6.0 }
 0x32c   :  { %v485_v56 = vmul.f32 %v484_v55, %v481_v49 }
 0x32e   :  { %v486_v57 = vmul.f32 0.16666667, %v485_v56 }
 0x330   :  { %920 = vmatmul.mubr.msk.f32.vlgmr.msra.gmra.mrb[6].mxu0 %vm635_vm2, %v486_v57 }
 0x403   :  { %v705_v1 = vpop.f32.mrb[6].mxu0 }
 0x404   :  { %v709_v3 = vadd.f32 %v705_v1, %v628_v52  ;;  %v921_v4 = vpop.f32.mrb[7].mxu0 }
 0x406   :  { %v717_v5 = vadd.f32 %v838_v2, %v709_v3 }
 0x408   :  { %v718_v6 = vadd.f32 3.0, %v717_v5 }
 0x40a   :  { %v719_v7 = vmax.f32 %v718_v6, 0.0 }
 0x40c   :  { %v720_v8 = vmin.f32 %v719_v7, 6.0 }
 0x40e   :  { %v721_v9 = vmul.f32 %v720_v8, %v717_v5 }
 0x410   :  { %v722_v10 = vmul.f32 0.16666667, %v721_v9 }
 0x412   :  { %931 = vmatmul.mubr.msk.f32.vlgmr.msra.gmra.mrb[6].mxu1 %vm635_vm2, %v722_v10 }
 0x4e5   :  { %v803_v11 = vpop.f32.mrb[6].mxu1 }
 0x4e6   :  { %v804_v12 = vadd.f32 %v839_v0, %v803_v11  ;;  %v932_v13 = vpop.f32.mrb[7].mxu1 }
 0x4e8   :  { %977 = vtanh.f32 %v804_v12 }
 0x4f2   :  { %v978_v14 = vpop.eup %977 }
 0x4f3   :  { %808 = vst [vmem:[#allocation16] sm:$0xff] %v978_v14 }
 0x4f4   :  { %1166 = shalt.err (!%p1163_p12)
}
 0x4f5   :  { %s1167_s13 = scalar_lea.hbm %s1482_s14, 128 }
 0x4f6   :  { %p1168_p13 = scmp.ne.s32.totalorder %s1482_s14, %s1167_s13  ;;  %p1171_p0 = scmp.lt.u32.totalorder %s1167_s13, %s1482_s14 }
 0x4f8   :  { %p1173_p1 = pnand %p1171_p0, %p1168_p13 }
 0x4fa   :  { %1176 = shalt.err (!%p1173_p1)
}
 0x4fb   :  { %818 = dma.vmem_to_hbm [thread:$0]  %s816_s11, 128, %s1482_s14, [#allocation4]  }
 0x4fc   :  { %1187 = dma.done.wait [#allocation4], 128  }
 0x4fd   :  { %1188 = vsyncadd [#allocation4], 4294967168 }
 0x4fe   :  { %822 = vsyncpa [#allocation3], 1 }
 0x4ff   :  { %823 = vsyncpa [#allocation6], 1 }
 0x500   :  { %824 = vsyncpa [#allocation9], 1 }
 0x501   :  { %825 = vsyncpa [#allocation12], 1 }
 0x502   :  { %826 = vsyncpa [#allocation15], 1 }
 0x503   :  { %827 = vsyncpa [#allocation4], 1 }

</bundles_post_ra>
